<compile_context>
chip_gen: v6e
topology: v6e:2x2x1
jax: 0.10.0
libtpu: 0.0.40
codegen_flags: <defaults>
</compile_context>

<pallas_src>
import jax
import jax.numpy as jnp
from jax.experimental import pallas as pl
from jax.experimental.pallas import tpu as pltpu

_BN_EPS = 1e-5


# ---------------------------------------------------------------------------
# Block-banded conv weights (built ONCE, outside the per-forward path).
#
# Activations live in a lane-dense (N, H, W*C) layout (bit-identical memory
# layout to NHWC).  A 3x3 "same" conv then becomes, per image,
#     out[h, w*Cout+co] = sum_dh  x[h+dh-1] @ B[dh]
# where B[dh] is a (W*Cin, W*Cout) block-banded matrix holding the (dh, dw)
# taps; band entries whose dw tap falls outside [0, W) are zero, which
# implements the W zero-padding with no padded activation copy at all.  The H
# halo is handled in-kernel by shifting the per-tap dot output by +-1 row.
# ---------------------------------------------------------------------------
def _band_weights(w_hwio, w):
    kh, kw, cin, cout = w_hwio.shape                 # (3, 3, Cin, Cout)
    src = jnp.arange(w)[:, None]                     # source column w'
    dst = jnp.arange(w)[None, :]                     # output column w
    dw = src - dst + 1                               # tap index, valid iff in {0,1,2}
    valid = (dw >= 0) & (dw <= 2)
    taps = w_hwio[:, jnp.clip(dw, 0, 2)]             # (3, W, W, Cin, Cout)
    taps = jnp.where(valid[None, :, :, None, None], taps, 0)
    band = jnp.transpose(taps, (0, 1, 3, 2, 4))      # (3, W, Cin, W, Cout)
    return band.reshape(3, w * cin, w * cout)        # (3, W*Cin, W*Cout)


def prepare_double_conv(params, w):
    """One-time preparation (NOT per forward): bf16 block-banded weights."""
    w1, w2 = params["w1"], params["w2"]
    # The banded formulation hard-codes kernel=3, stride=1, padding=1.
    assert w1.shape[:2] == (3, 3) and w2.shape[:2] == (3, 3), \
        "banded conv path requires kernel_size=3 (stride=1, padding=1 are baked in)"
    assert w2.shape[2] == w1.shape[3] == w2.shape[3], "DoubleConv: conv2 is Cout->Cout"
    return {
        "wb1": _band_weights(w1, w).astype(jnp.bfloat16),   # (3, W*Cin , W*Cout)
        "wb2": _band_weights(w2, w).astype(jnp.bfloat16),   # (3, W*Cout, W*Cout)
        "gamma1": params["gamma1"].astype(jnp.float32),
        "beta1": params["beta1"].astype(jnp.float32),
        "gamma2": params["gamma2"].astype(jnp.float32),
        "beta2": params["beta2"].astype(jnp.float32),
    }


# ---------------------------------------------------------------------------
# Kernels.
# ---------------------------------------------------------------------------
def _conv_core(a_bf16, wb_ref, acc_ref):
    """3x3 conv of B images as 3 accumulating MXU dots (one per dh tap).

    a_bf16 : (B, H, W*Cin)   bf16 activations (already BN+ReLU'd for conv2)
    wb_ref : (3, W*Cin, W*Cout) bf16 block-banded weights, index = dh
    acc_ref: (B, H, W*Cout)  f32 VMEM scratch accumulator
    """
    b, h, k = a_bf16.shape
    n = acc_ref.shape[-1]
    af = a_bf16.reshape(b * h, k)                     # M = B*H rows for the MXU

    # dh=1 (center): full-M dot initialises the accumulator.
    acc_ref[...] = jnp.dot(af, wb_ref[1],
                           preferred_element_type=jnp.float32).reshape(b, h, n)
    # dh=0 (upper): out[h] += x[h-1] @ B0  -> shift the dot output down 1 row.
    c0 = jnp.dot(af, wb_ref[0],
                 preferred_element_type=jnp.float32).reshape(b, h, n)
    acc_ref[:, 1:, :] += c0[:, : h - 1, :]
    # dh=2 (lower): out[h] += x[h+1] @ B2  -> shift the dot output up 1 row.
    c2 = jnp.dot(af, wb_ref[2],
                 preferred_element_type=jnp.float32).reshape(b, h, n)
    acc_ref[:, : h - 1, :] += c2[:, 1:, :]


def _stats_from_acc(acc, st_ref):
    """One-pass BN batch-stat partials [sum, sum-of-squares] from the f32 acc."""
    b, h, n = acc.shape
    a2 = acc.reshape(b * h, n)
    s = jnp.sum(a2, axis=0, keepdims=True)            # (1, W*Cout)
    q = jnp.sum(a2 * a2, axis=0, keepdims=True)       # (1, W*Cout)
    st_ref[0] = jnp.concatenate([s, q], axis=0)       # (2, W*Cout)


def _conv_stats_kernel(x_ref, wb_ref, o_ref, st_ref, acc_ref):
    _conv_core(x_ref[...].astype(jnp.bfloat16), wb_ref, acc_ref)
    acc = acc_ref[...]
    o_ref[...] = acc.astype(o_ref.dtype)               # bf16 intermediate to HBM
    _stats_from_acc(acc, st_ref)


def _bnrelu_conv_stats_kernel(x_ref, sc_ref, sh_ref, wb_ref, o_ref, st_ref, acc_ref):
    # Fused prologue: y = relu(x * scale + shift) (training-mode BN affine, f32),
    # then conv(y) in bf16.  The BN output never round-trips HBM.
    a = jnp.maximum(x_ref[...].astype(jnp.float32) * sc_ref[...] + sh_ref[...], 0.0)
    _conv_core(a.astype(jnp.bfloat16), wb_ref, acc_ref)
    acc = acc_ref[...]
    o_ref[...] = acc.astype(o_ref.dtype)
    _stats_from_acc(acc, st_ref)


def _bn_relu_kernel(x_ref, sc_ref, sh_ref, o_ref):
    y = x_ref[...].astype(jnp.float32) * sc_ref[...] + sh_ref[...]
    o_ref[...] = jnp.maximum(y, 0.0).astype(o_ref.dtype)


# ---------------------------------------------------------------------------
# pallas_call wrappers.
# ---------------------------------------------------------------------------
def _images_per_block(n, h, w_cin, w_cout):
    """Images batched per grid step: largest B that (a) divides n, (b) keeps
    >= 2 grid steps when possible (both v7x TensorCores busy), (c) keeps the
    per-step VMEM footprint modest."""
    if n < 4 or n % 2:
        return 1
    per_img = h * (4 * w_cin + 4 * w_cout + 2 * w_cout)   # x(f32)+acc(f32)+y(bf16)
    budget = 8 << 20
    b = n // 2
    while b > 1 and (n % b or b * per_img > budget):
        b -= 1
    return max(b, 1)


def _conv_bn_stats(x, wb, bn):
    n, h, wci = x.shape
    wco = wb.shape[-1]
    g = n // bn
    return pl.pallas_call(
        _conv_stats_kernel,
        out_shape=(jax.ShapeDtypeStruct((n, h, wco), jnp.bfloat16),
                   jax.ShapeDtypeStruct((g, 2, wco), jnp.float32)),
        grid=(g,),
        in_specs=[
            pl.BlockSpec((bn, h, wci), lambda i: (i, 0, 0)),
            pl.BlockSpec((3, wci, wco), lambda i: (0, 0, 0)),
        ],
        out_specs=(
            pl.BlockSpec((bn, h, wco), lambda i: (i, 0, 0)),
            pl.BlockSpec((1, 2, wco), lambda i: (i, 0, 0)),
        ),
        scratch_shapes=[pltpu.VMEM((bn, h, wco), jnp.float32)],
        compiler_params=pltpu.CompilerParams(dimension_semantics=("parallel",)),
    )(x, wb)


def _bnrelu_conv_bn_stats(x, scale_row, shift_row, wb, bn):
    n, h, wci = x.shape
    wco = wb.shape[-1]
    g = n // bn
    return pl.pallas_call(
        _bnrelu_conv_stats_kernel,
        out_shape=(jax.ShapeDtypeStruct((n, h, wco), jnp.bfloat16),
                   jax.ShapeDtypeStruct((g, 2, wco), jnp.float32)),
        grid=(g,),
        in_specs=[
            pl.BlockSpec((bn, h, wci), lambda i: (i, 0, 0)),
            pl.BlockSpec((1, wci), lambda i: (0, 0)),
            pl.BlockSpec((1, wci), lambda i: (0, 0)),
            pl.BlockSpec((3, wci, wco), lambda i: (0, 0, 0)),
        ],
        out_specs=(
            pl.BlockSpec((bn, h, wco), lambda i: (i, 0, 0)),
            pl.BlockSpec((1, 2, wco), lambda i: (i, 0, 0)),
        ),
        scratch_shapes=[pltpu.VMEM((bn, h, wco), jnp.float32)],
        compiler_params=pltpu.CompilerParams(dimension_semantics=("parallel",)),
    )(x, scale_row, shift_row, wb)


def _bn_relu(x, scale_row, shift_row, bn, out_dtype):
    n, h, wc = x.shape
    g = n // bn
    return pl.pallas_call(
        _bn_relu_kernel,
        out_shape=jax.ShapeDtypeStruct((n, h, wc), out_dtype),
        grid=(g,),
        in_specs=[
            pl.BlockSpec((bn, h, wc), lambda i: (i, 0, 0)),
            pl.BlockSpec((1, wc), lambda i: (0, 0)),
            pl.BlockSpec((1, wc), lambda i: (0, 0)),
        ],
        out_specs=pl.BlockSpec((bn, h, wc), lambda i: (i, 0, 0)),
        compiler_params=pltpu.CompilerParams(dimension_semantics=("parallel",)),
    )(x, scale_row, shift_row)


def _bn_affine(stats, gamma, beta, count, w, cout, eps=_BN_EPS):
    # stats: (n_blocks, 2, W*Cout) per-block [sum, sumsq] partials (channels interleaved).
    s = stats[:, 0, :].sum(axis=0).reshape(w, cout).sum(axis=0)
    q = stats[:, 1, :].sum(axis=0).reshape(w, cout).sum(axis=0)
    mean = s / count
    var = jnp.maximum(q / count - mean * mean, 0.0)       # biased var (training-mode BN)
    inv = jax.lax.rsqrt(var + eps)
    scale = gamma.astype(jnp.float32) * inv
    shift = beta.astype(jnp.float32) - mean * scale
    # interleaved (1, W*Cout) rows matching the lane-dense activation layout
    return jnp.tile(scale, w)[None], jnp.tile(shift, w)[None]


# ---------------------------------------------------------------------------
# DoubleConv wrapper (accepts NCHW like the PyTorch module).
# ---------------------------------------------------------------------------
def init_double_conv_params(key, in_channels, out_channels, dtype=jnp.float32):
    ks = jax.random.split(key, 8)
    return {
        "w1": 0.1 * jax.random.normal(ks[0], (3, 3, in_channels, out_channels), dtype),
        # b1/b2 are used ONLY by the pure-JAX reference: training-mode BN
        # subtracts the batch mean right after the conv, so the bias cancels
        # exactly and the Pallas path drops it (dead compute + dead DMA).
        "b1": 0.1 * jax.random.normal(ks[1], (out_channels,), dtype),
        "gamma1": 1.0 + 0.1 * jax.random.normal(ks[2], (out_channels,), dtype),
        "beta1": 0.1 * jax.random.normal(ks[3], (out_channels,), dtype),
        "w2": 0.1 * jax.random.normal(ks[4], (3, 3, out_channels, out_channels), dtype),
        "b2": 0.1 * jax.random.normal(ks[5], (out_channels,), dtype),
        "gamma2": 1.0 + 0.1 * jax.random.normal(ks[6], (out_channels,), dtype),
        "beta2": 0.1 * jax.random.normal(ks[7], (out_channels,), dtype),
    }


@jax.jit
def double_conv(x_nchw, prep):
    n, cin, h, w = x_nchw.shape
    wco = prep["wb1"].shape[-1]
    cout = wco // w

    # NCHW -> NHWC (single boundary layout op), then merge (W, C) into one
    # lane-dense trailing dim of width W*C (the reshape is free in memory).
    x = jnp.transpose(x_nchw, (0, 2, 3, 1)).reshape(n, h, w * cin)
    count = n * h * w
    bn = _images_per_block(n, h, w * cin, wco)

    # K1: conv1 (+ BN1 partial stats).  Conv bias dropped (cancelled by BN).
    y1, st1 = _conv_bn_stats(x, prep["wb1"], bn)
    sc1, sh1 = _bn_affine(st1, prep["gamma1"], prep["beta1"], count, w, cout)

    # K2: BN1 + ReLU1 fused into conv2's prologue (+ BN2 partial stats).
    y2, st2 = _bnrelu_conv_bn_stats(y1, sc1, sh1, prep["wb2"], bn)
    sc2, sh2 = _bn_affine(st2, prep["gamma2"], prep["beta2"], count, w, cout)

    # K3: final BN2 + ReLU2 (elementwise, full multi-image blocks).
    out = _bn_relu(y2, sc2, sh2, bn, out_dtype=x_nchw.dtype)

    return jnp.transpose(out.reshape(n, h, w, cout), (0, 3, 1, 2))   # back to NCHW


# ---------------------------------------------------------------------------
# Pure-JAX reference (mirrors PyTorch exactly, including the conv bias).
# ---------------------------------------------------------------------------
def _ref_double_conv(x_nchw, params, eps=_BN_EPS):
    def conv(x, wgt, b):
        y = jax.lax.conv_general_dilated(
            x, wgt, window_strides=(1, 1), padding="SAME",
            dimension_numbers=("NHWC", "HWIO", "NHWC"))
        return y + b[None, None, None, :]

    def bn_relu(x, g, b):
        m = jnp.mean(x, axis=(0, 1, 2), keepdims=True)
        v = jnp.var(x, axis=(0, 1, 2), keepdims=True)      # biased
        return jnp.maximum((x - m) * jax.lax.rsqrt(v + eps) * g + b, 0.0)

    x = jnp.transpose(x_nchw, (0, 2, 3, 1))
    y = bn_relu(conv(x, params["w1"], params["b1"]), params["gamma1"], params["beta1"])
    y = bn_relu(conv(y, params["w2"], params["b2"]), params["gamma2"], params["beta2"])
    return jnp.transpose(y, (0, 3, 1, 2))


if __name__ == "__main__":
    key = jax.random.PRNGKey(0)
    k_x, k_p = jax.random.split(key)

    N, C_IN, C_OUT, H, W = 4, 4, 8, 16, 16
    x = jax.random.normal(k_x, (N, C_IN, H, W), jnp.float32)     # NCHW like PyTorch
    params = init_double_conv_params(k_p, C_IN, C_OUT)

    prep = prepare_double_conv(params, W)    # one-time band build (not per forward)

    out = jax.block_until_ready(double_conv(x, prep))
    assert out.shape == (N, C_OUT, H, W)

    ref = _ref_double_conv(x, params)
    err = float(jnp.max(jnp.abs(out - ref)))
    # bf16 MXU operands + bf16 HBM intermediates vs a pure-f32 reference:
    # agreement is at the ~1e-2 level (values are O(1) after BatchNorm).
    assert err < 1.2e-1, f"max abs error {err}"

    print("KERNEL_OK")
</pallas_src>

<mosaic_0001>
module attributes {stable_mosaic.version = 11 : i64} {
  func.func @_conv_stats_kernel(%arg0: i32, %arg1: memref<2x16x64xf32, #tpu.memory_space<vmem>>, %arg2: memref<3x64x128xbf16, #tpu.memory_space<vmem>>, %arg3: memref<2x16x128xbf16, #tpu.memory_space<vmem>>, %arg4: memref<1x2x128xf32, #tpu.memory_space<vmem>>, %arg5: memref<2x16x128xf32, #tpu.memory_space<vmem>>) attributes {dimension_semantics = [#tpu.dimension_semantics<parallel>], iteration_bounds = array<i64: 2>, scalar_prefetch = 0 : i64, scratch_operands = 1 : i64, tpu.core_type = #tpu.core_type<tc>, window_params = [{transform_indices = @transform_0, window_bounds = array<i64: 2, 16, 64>}, {pipeline_mode = #tpu.pipeline_mode<synchronous>, transform_indices = @transform_1, window_bounds = array<i64: 3, 64, 128>}, {transform_indices = @transform_2, window_bounds = array<i64: 2, 16, 128>}, {transform_indices = @transform_3, window_bounds = array<i64: 1, 2, 128>}]} {
    %c0 = arith.constant 0 : index
    %c0_0 = arith.constant 0 : index
    %c0_1 = arith.constant 0 : index
    %0 = vector.load %arg1[%c0, %c0_0, %c0_1] : memref<2x16x64xf32, #tpu.memory_space<vmem>>, vector<2x16x64xf32>
    %1 = arith.truncf %0 : vector<2x16x64xf32> to vector<2x16x64xbf16>
    %2 = vector.shape_cast %1 : vector<2x16x64xbf16> to vector<32x64xbf16>
    %c1 = arith.constant 1 : index
    %c0_2 = arith.constant 0 : index
    %c0_3 = arith.constant 0 : index
    %3 = vector.load %arg2[%c1, %c0_2, %c0_3] : memref<3x64x128xbf16, #tpu.memory_space<vmem>>, vector<1x64x128xbf16>
    %4 = vector.shape_cast %3 : vector<1x64x128xbf16> to vector<64x128xbf16>
    %cst = arith.constant dense<0.000000e+00> : vector<32x128xf32>
    %5 = tpu.matmul %2, %4, %cst {dimension_numbers = #tpu.dot_dimension_numbers<[1], [0], [0], [1], [0, 0, 1, 1], [], []>} : vector<32x64xbf16>, vector<64x128xbf16>, vector<32x128xf32> -> vector<32x128xf32>
    %6 = vector.shape_cast %5 : vector<32x128xf32> to vector<2x16x128xf32>
    %c0_4 = arith.constant 0 : index
    %c0_5 = arith.constant 0 : index
    %c0_6 = arith.constant 0 : index
    %7 = vector.load %arg5[%c0_4, %c0_5, %c0_6] : memref<2x16x128xf32, #tpu.memory_space<vmem>>, vector<2x16x128xf32>
    tpu.vector_store %arg5[%c0_4, %c0_5, %c0_6], %6 {strides = array<i32>} : memref<2x16x128xf32, #tpu.memory_space<vmem>>, vector<2x16x128xf32>,
    %c0_7 = arith.constant 0 : index
    %c0_8 = arith.constant 0 : index
    %c0_9 = arith.constant 0 : index
    %8 = vector.load %arg2[%c0_7, %c0_8, %c0_9] : memref<3x64x128xbf16, #tpu.memory_space<vmem>>, vector<1x64x128xbf16>
    %9 = vector.shape_cast %8 : vector<1x64x128xbf16> to vector<64x128xbf16>
    %cst_10 = arith.constant dense<0.000000e+00> : vector<32x128xf32>
    %10 = tpu.matmul %2, %9, %cst_10 {dimension_numbers = #tpu.dot_dimension_numbers<[1], [0], [0], [1], [0, 0, 1, 1], [], []>} : vector<32x64xbf16>, vector<64x128xbf16>, vector<32x128xf32> -> vector<32x128xf32>
    %11 = vector.shape_cast %10 : vector<32x128xf32> to vector<2x16x128xf32>
    %c0_11 = arith.constant 0 : index
    %c1_12 = arith.constant 1 : index
    %c0_13 = arith.constant 0 : index
    %12 = vector.load %arg5[%c0_11, %c1_12, %c0_13] : memref<2x16x128xf32, #tpu.memory_space<vmem>>, vector<2x15x128xf32>
    %13 = vector.extract_strided_slice %11 {offsets = [0, 0, 0], sizes = [2, 15, 128], strides = [1, 1, 1]} : vector<2x16x128xf32> to vector<2x15x128xf32>
    %14 = arith.addf %12, %13 : vector<2x15x128xf32>
    %c0_14 = arith.constant 0 : index
    %c1_15 = arith.constant 1 : index
    %c0_16 = arith.constant 0 : index
    %15 = vector.load %arg5[%c0_14, %c1_15, %c0_16] : memref<2x16x128xf32, #tpu.memory_space<vmem>>, vector<2x15x128xf32>
    tpu.vector_store %arg5[%c0_14, %c1_15, %c0_16], %14 {strides = array<i32>} : memref<2x16x128xf32, #tpu.memory_space<vmem>>, vector<2x15x128xf32>,
    %c2 = arith.constant 2 : index
    %c0_17 = arith.constant 0 : index
    %c0_18 = arith.constant 0 : index
    %16 = vector.load %arg2[%c2, %c0_17, %c0_18] : memref<3x64x128xbf16, #tpu.memory_space<vmem>>, vector<1x64x128xbf16>
    %17 = vector.shape_cast %16 : vector<1x64x128xbf16> to vector<64x128xbf16>
    %cst_19 = arith.constant dense<0.000000e+00> : vector<32x128xf32>
    %18 = tpu.matmul %2, %17, %cst_19 {dimension_numbers = #tpu.dot_dimension_numbers<[1], [0], [0], [1], [0, 0, 1, 1], [], []>} : vector<32x64xbf16>, vector<64x128xbf16>, vector<32x128xf32> -> vector<32x128xf32>
    %19 = vector.shape_cast %18 : vector<32x128xf32> to vector<2x16x128xf32>
    %c0_20 = arith.constant 0 : index
    %c0_21 = arith.constant 0 : index
    %c0_22 = arith.constant 0 : index
    %20 = vector.load %arg5[%c0_20, %c0_21, %c0_22] : memref<2x16x128xf32, #tpu.memory_space<vmem>>, vector<2x15x128xf32>
    %21 = vector.extract_strided_slice %19 {offsets = [0, 1, 0], sizes = [2, 15, 128], strides = [1, 1, 1]} : vector<2x16x128xf32> to vector<2x15x128xf32>
    %22 = arith.addf %20, %21 : vector<2x15x128xf32>
    %c0_23 = arith.constant 0 : index
    %c0_24 = arith.constant 0 : index
    %c0_25 = arith.constant 0 : index
    %23 = vector.load %arg5[%c0_23, %c0_24, %c0_25] : memref<2x16x128xf32, #tpu.memory_space<vmem>>, vector<2x15x128xf32>
    tpu.vector_store %arg5[%c0_23, %c0_24, %c0_25], %22 {strides = array<i32>} : memref<2x16x128xf32, #tpu.memory_space<vmem>>, vector<2x15x128xf32>,
    %c0_26 = arith.constant 0 : index
    %c0_27 = arith.constant 0 : index
    %c0_28 = arith.constant 0 : index
    %24 = vector.load %arg5[%c0_26, %c0_27, %c0_28] : memref<2x16x128xf32, #tpu.memory_space<vmem>>, vector<2x16x128xf32>
    %25 = arith.truncf %24 : vector<2x16x128xf32> to vector<2x16x128xbf16>
    %c0_29 = arith.constant 0 : index
    %c0_30 = arith.constant 0 : index
    %c0_31 = arith.constant 0 : index
    %26 = vector.load %arg3[%c0_29, %c0_30, %c0_31] : memref<2x16x128xbf16, #tpu.memory_space<vmem>>, vector<2x16x128xbf16>
    tpu.vector_store %arg3[%c0_29, %c0_30, %c0_31], %25 {strides = array<i32>} : memref<2x16x128xbf16, #tpu.memory_space<vmem>>, vector<2x16x128xbf16>,
    %27 = vector.shape_cast %24 : vector<2x16x128xf32> to vector<32x128xf32>
    %cst_32 = arith.constant dense<0.000000e+00> : vector<128xf32>
    %28 = vector.multi_reduction <add>, %27, %cst_32 [0] : vector<32x128xf32> to vector<128xf32>
    %29 = vector.shape_cast %28 : vector<128xf32> to vector<1x128xf32>
    %30 = arith.mulf %27, %27 : vector<32x128xf32>
    %cst_33 = arith.constant dense<0.000000e+00> : vector<128xf32>
    %31 = vector.multi_reduction <add>, %30, %cst_33 [0] : vector<32x128xf32> to vector<128xf32>
    %32 = vector.shape_cast %31 : vector<128xf32> to vector<1x128xf32>
    %33 = tpu.concatenate %29, %32 in 0 : vector<1x128xf32>, vector<1x128xf32> -> vector<2x128xf32>
    %c0_34 = arith.constant 0 : index
    %c0_35 = arith.constant 0 : index
    %c0_36 = arith.constant 0 : index
    %34 = vector.load %arg4[%c0_34, %c0_35, %c0_36] : memref<1x2x128xf32, #tpu.memory_space<vmem>>, vector<1x2x128xf32>
    %35 = vector.shape_cast %34 : vector<1x2x128xf32> to vector<2x128xf32>
    %36 = vector.shape_cast %33 : vector<2x128xf32> to vector<1x2x128xf32>
    tpu.vector_store %arg4[%c0_34, %c0_35, %c0_36], %36 {strides = array<i32>} : memref<1x2x128xf32, #tpu.memory_space<vmem>>, vector<1x2x128xf32>,
    return
  }
  func.func @transform_0(%arg0: i32) -> (i32, i32, i32) {
    %c0_i32 = arith.constant 0 : i32
    %c0_i32_0 = arith.constant 0 : i32
    %c0_i32_1 = arith.constant 0 : i32
    return %arg0, %c0_i32, %c0_i32_0 : i32, i32, i32
  }
  func.func @transform_1(%arg0: i32) -> (i32, i32, i32) {
    %c0_i32 = arith.constant 0 : i32
    %c0_i32_0 = arith.constant 0 : i32
    %c0_i32_1 = arith.constant 0 : i32
    %c0_i32_2 = arith.constant 0 : i32
    return %c0_i32, %c0_i32_0, %c0_i32_1 : i32, i32, i32
  }
  func.func @transform_2(%arg0: i32) -> (i32, i32, i32) {
    %c0_i32 = arith.constant 0 : i32
    %c0_i32_0 = arith.constant 0 : i32
    %c0_i32_1 = arith.constant 0 : i32
    return %arg0, %c0_i32, %c0_i32_0 : i32, i32, i32
  }
  func.func @transform_3(%arg0: i32) -> (i32, i32, i32) {
    %c0_i32 = arith.constant 0 : i32
    %c0_i32_0 = arith.constant 0 : i32
    %c0_i32_1 = arith.constant 0 : i32
    return %arg0, %c0_i32, %c0_i32_0 : i32, i32, i32
  }
}

module attributes {stable_mosaic.version = 11 : i64} {
  func.func @_bnrelu_conv_stats_kernel(%arg0: i32, %arg1: memref<2x16x128xbf16, #tpu.memory_space<vmem>>, %arg2: memref<1x128xf32, #tpu.memory_space<vmem>>, %arg3: memref<1x128xf32, #tpu.memory_space<vmem>>, %arg4: memref<3x128x128xbf16, #tpu.memory_space<vmem>>, %arg5: memref<2x16x128xbf16, #tpu.memory_space<vmem>>, %arg6: memref<1x2x128xf32, #tpu.memory_space<vmem>>, %arg7: memref<2x16x128xf32, #tpu.memory_space<vmem>>) attributes {dimension_semantics = [#tpu.dimension_semantics<parallel>], iteration_bounds = array<i64: 2>, scalar_prefetch = 0 : i64, scratch_operands = 1 : i64, tpu.core_type = #tpu.core_type<tc>, window_params = [{transform_indices = @transform_0, window_bounds = array<i64: 2, 16, 128>}, {pipeline_mode = #tpu.pipeline_mode<synchronous>, transform_indices = @transform_1, window_bounds = array<i64: 1, 128>}, {pipeline_mode = #tpu.pipeline_mode<synchronous>, transform_indices = @transform_2, window_bounds = array<i64: 1, 128>}, {pipeline_mode = #tpu.pipeline_mode<synchronous>, transform_indices = @transform_3, window_bounds = array<i64: 3, 128, 128>}, {transform_indices = @transform_4, window_bounds = array<i64: 2, 16, 128>}, {transform_indices = @transform_5, window_bounds = array<i64: 1, 2, 128>}]} {
    %c0 = arith.constant 0 : index
    %c0_0 = arith.constant 0 : index
    %c0_1 = arith.constant 0 : index
    %0 = vector.load %arg1[%c0, %c0_0, %c0_1] : memref<2x16x128xbf16, #tpu.memory_space<vmem>>, vector<2x16x128xbf16>
    %1 = arith.extf %0 : vector<2x16x128xbf16> to vector<2x16x128xf32>
    %c0_2 = arith.constant 0 : index
    %c0_3 = arith.constant 0 : index
    %2 = vector.load %arg2[%c0_2, %c0_3] : memref<1x128xf32, #tpu.memory_space<vmem>>, vector<1x128xf32>
    %3 = vector.shape_cast %2 : vector<1x128xf32> to vector<1x1x128xf32>
    %4 = vector.broadcast %3 : vector<1x1x128xf32> to vector<2x16x128xf32>
    %5 = arith.mulf %1, %4 : vector<2x16x128xf32>
    %c0_4 = arith.constant 0 : index
    %c0_5 = arith.constant 0 : index
    %6 = vector.load %arg3[%c0_4, %c0_5] : memref<1x128xf32, #tpu.memory_space<vmem>>, vector<1x128xf32>
    %7 = vector.shape_cast %6 : vector<1x128xf32> to vector<1x1x128xf32>
    %8 = vector.broadcast %7 : vector<1x1x128xf32> to vector<2x16x128xf32>
    %9 = arith.addf %5, %8 : vector<2x16x128xf32>
    %cst = arith.constant 0.000000e+00 : f32
    %10 = vector.broadcast %cst : f32 to vector<2x16x128xf32>
    %11 = arith.maximumf %9, %10 : vector<2x16x128xf32>
    %12 = arith.truncf %11 : vector<2x16x128xf32> to vector<2x16x128xbf16>
    %13 = vector.shape_cast %12 : vector<2x16x128xbf16> to vector<32x128xbf16>
    %c1 = arith.constant 1 : index
    %c0_6 = arith.constant 0 : index
    %c0_7 = arith.constant 0 : index
    %14 = vector.load %arg4[%c1, %c0_6, %c0_7] : memref<3x128x128xbf16, #tpu.memory_space<vmem>>, vector<1x128x128xbf16>
    %15 = vector.shape_cast %14 : vector<1x128x128xbf16> to vector<128x128xbf16>
    %cst_8 = arith.constant dense<0.000000e+00> : vector<32x128xf32>
    %16 = tpu.matmul %13, %15, %cst_8 {dimension_numbers = #tpu.dot_dimension_numbers<[1], [0], [0], [1], [0, 0, 1, 1], [], []>} : vector<32x128xbf16>, vector<128x128xbf16>, vector<32x128xf32> -> vector<32x128xf32>
    %17 = vector.shape_cast %16 : vector<32x128xf32> to vector<2x16x128xf32>
    %c0_9 = arith.constant 0 : index
    %c0_10 = arith.constant 0 : index
    %c0_11 = arith.constant 0 : index
    %18 = vector.load %arg7[%c0_9, %c0_10, %c0_11] : memref<2x16x128xf32, #tpu.memory_space<vmem>>, vector<2x16x128xf32>
    tpu.vector_store %arg7[%c0_9, %c0_10, %c0_11], %17 {strides = array<i32>} : memref<2x16x128xf32, #tpu.memory_space<vmem>>, vector<2x16x128xf32>,
    %c0_12 = arith.constant 0 : index
    %c0_13 = arith.constant 0 : index
    %c0_14 = arith.constant 0 : index
    %19 = vector.load %arg4[%c0_12, %c0_13, %c0_14] : memref<3x128x128xbf16, #tpu.memory_space<vmem>>, vector<1x128x128xbf16>
    %20 = vector.shape_cast %19 : vector<1x128x128xbf16> to vector<128x128xbf16>
    %cst_15 = arith.constant dense<0.000000e+00> : vector<32x128xf32>
    %21 = tpu.matmul %13, %20, %cst_15 {dimension_numbers = #tpu.dot_dimension_numbers<[1], [0], [0], [1], [0, 0, 1, 1], [], []>} : vector<32x128xbf16>, vector<128x128xbf16>, vector<32x128xf32> -> vector<32x128xf32>
    %22 = vector.shape_cast %21 : vector<32x128xf32> to vector<2x16x128xf32>
    %c0_16 = arith.constant 0 : index
    %c1_17 = arith.constant 1 : index
    %c0_18 = arith.constant 0 : index
    %23 = vector.load %arg7[%c0_16, %c1_17, %c0_18] : memref<2x16x128xf32, #tpu.memory_space<vmem>>, vector<2x15x128xf32>
    %24 = vector.extract_strided_slice %22 {offsets = [0, 0, 0], sizes = [2, 15, 128], strides = [1, 1, 1]} : vector<2x16x128xf32> to vector<2x15x128xf32>
    %25 = arith.addf %23, %24 : vector<2x15x128xf32>
    %c0_19 = arith.constant 0 : index
    %c1_20 = arith.constant 1 : index
    %c0_21 = arith.constant 0 : index
    %26 = vector.load %arg7[%c0_19, %c1_20, %c0_21] : memref<2x16x128xf32, #tpu.memory_space<vmem>>, vector<2x15x128xf32>
    tpu.vector_store %arg7[%c0_19, %c1_20, %c0_21], %25 {strides = array<i32>} : memref<2x16x128xf32, #tpu.memory_space<vmem>>, vector<2x15x128xf32>,
    %c2 = arith.constant 2 : index
    %c0_22 = arith.constant 0 : index
    %c0_23 = arith.constant 0 : index
    %27 = vector.load %arg4[%c2, %c0_22, %c0_23] : memref<3x128x128xbf16, #tpu.memory_space<vmem>>, vector<1x128x128xbf16>
    %28 = vector.shape_cast %27 : vector<1x128x128xbf16> to vector<128x128xbf16>
    %cst_24 = arith.constant dense<0.000000e+00> : vector<32x128xf32>
    %29 = tpu.matmul %13, %28, %cst_24 {dimension_numbers = #tpu.dot_dimension_numbers<[1], [0], [0], [1], [0, 0, 1, 1], [], []>} : vector<32x128xbf16>, vector<128x128xbf16>, vector<32x128xf32> -> vector<32x128xf32>
    %30 = vector.shape_cast %29 : vector<32x128xf32> to vector<2x16x128xf32>
    %c0_25 = arith.constant 0 : index
    %c0_26 = arith.constant 0 : index
    %c0_27 = arith.constant 0 : index
    %31 = vector.load %arg7[%c0_25, %c0_26, %c0_27] : memref<2x16x128xf32, #tpu.memory_space<vmem>>, vector<2x15x128xf32>
    %32 = vector.extract_strided_slice %30 {offsets = [0, 1, 0], sizes = [2, 15, 128], strides = [1, 1, 1]} : vector<2x16x128xf32> to vector<2x15x128xf32>
    %33 = arith.addf %31, %32 : vector<2x15x128xf32>
    %c0_28 = arith.constant 0 : index
    %c0_29 = arith.constant 0 : index
    %c0_30 = arith.constant 0 : index
    %34 = vector.load %arg7[%c0_28, %c0_29, %c0_30] : memref<2x16x128xf32, #tpu.memory_space<vmem>>, vector<2x15x128xf32>
    tpu.vector_store %arg7[%c0_28, %c0_29, %c0_30], %33 {strides = array<i32>} : memref<2x16x128xf32, #tpu.memory_space<vmem>>, vector<2x15x128xf32>,
    %c0_31 = arith.constant 0 : index
    %c0_32 = arith.constant 0 : index
    %c0_33 = arith.constant 0 : index
    %35 = vector.load %arg7[%c0_31, %c0_32, %c0_33] : memref<2x16x128xf32, #tpu.memory_space<vmem>>, vector<2x16x128xf32>
    %36 = arith.truncf %35 : vector<2x16x128xf32> to vector<2x16x128xbf16>
    %c0_34 = arith.constant 0 : index
    %c0_35 = arith.constant 0 : index
    %c0_36 = arith.constant 0 : index
    %37 = vector.load %arg5[%c0_34, %c0_35, %c0_36] : memref<2x16x128xbf16, #tpu.memory_space<vmem>>, vector<2x16x128xbf16>
    tpu.vector_store %arg5[%c0_34, %c0_35, %c0_36], %36 {strides = array<i32>} : memref<2x16x128xbf16, #tpu.memory_space<vmem>>, vector<2x16x128xbf16>,
    %38 = vector.shape_cast %35 : vector<2x16x128xf32> to vector<32x128xf32>
    %cst_37 = arith.constant dense<0.000000e+00> : vector<128xf32>
    %39 = vector.multi_reduction <add>, %38, %cst_37 [0] : vector<32x128xf32> to vector<128xf32>
    %40 = vector.shape_cast %39 : vector<128xf32> to vector<1x128xf32>
    %41 = arith.mulf %38, %38 : vector<32x128xf32>
    %cst_38 = arith.constant dense<0.000000e+00> : vector<128xf32>
    %42 = vector.multi_reduction <add>, %41, %cst_38 [0] : vector<32x128xf32> to vector<128xf32>
    %43 = vector.shape_cast %42 : vector<128xf32> to vector<1x128xf32>
    %44 = tpu.concatenate %40, %43 in 0 : vector<1x128xf32>, vector<1x128xf32> -> vector<2x128xf32>
    %c0_39 = arith.constant 0 : index
    %c0_40 = arith.constant 0 : index
    %c0_41 = arith.constant 0 : index
    %45 = vector.load %arg6[%c0_39, %c0_40, %c0_41] : memref<1x2x128xf32, #tpu.memory_space<vmem>>, vector<1x2x128xf32>
    %46 = vector.shape_cast %45 : vector<1x2x128xf32> to vector<2x128xf32>
    %47 = vector.shape_cast %44 : vector<2x128xf32> to vector<1x2x128xf32>
    tpu.vector_store %arg6[%c0_39, %c0_40, %c0_41], %47 {strides = array<i32>} : memref<1x2x128xf32, #tpu.memory_space<vmem>>, vector<1x2x128xf32>,
    return
  }
  func.func @transform_0(%arg0: i32) -> (i32, i32, i32) {
    %c0_i32 = arith.constant 0 : i32
    %c0_i32_0 = arith.constant 0 : i32
    %c0_i32_1 = arith.constant 0 : i32
    return %arg0, %c0_i32, %c0_i32_0 : i32, i32, i32
  }
  func.func @transform_1(%arg0: i32) -> (i32, i32) {
    %c0_i32 = arith.constant 0 : i32
    %c0_i32_0 = arith.constant 0 : i32
    %c0_i32_1 = arith.constant 0 : i32
    return %c0_i32, %c0_i32_0 : i32, i32
  }
  func.func @transform_2(%arg0: i32) -> (i32, i32) {
    %c0_i32 = arith.constant 0 : i32
    %c0_i32_0 = arith.constant 0 : i32
    %c0_i32_1 = arith.constant 0 : i32
    return %c0_i32, %c0_i32_0 : i32, i32
  }
  func.func @transform_3(%arg0: i32) -> (i32, i32, i32) {
    %c0_i32 = arith.constant 0 : i32
    %c0_i32_0 = arith.constant 0 : i32
    %c0_i32_1 = arith.constant 0 : i32
    %c0_i32_2 = arith.constant 0 : i32
    return %c0_i32, %c0_i32_0, %c0_i32_1 : i32, i32, i32
  }
  func.func @transform_4(%arg0: i32) -> (i32, i32, i32) {
    %c0_i32 = arith.constant 0 : i32
    %c0_i32_0 = arith.constant 0 : i32
    %c0_i32_1 = arith.constant 0 : i32
    return %arg0, %c0_i32, %c0_i32_0 : i32, i32, i32
  }
  func.func @transform_5(%arg0: i32) -> (i32, i32, i32) {
    %c0_i32 = arith.constant 0 : i32
    %c0_i32_0 = arith.constant 0 : i32
    %c0_i32_1 = arith.constant 0 : i32
    return %arg0, %c0_i32, %c0_i32_0 : i32, i32, i32
  }
}

module attributes {stable_mosaic.version = 11 : i64} {
  func.func @_bn_relu_kernel(%arg0: i32, %arg1: memref<2x16x128xbf16, #tpu.memory_space<vmem>>, %arg2: memref<1x128xf32, #tpu.memory_space<vmem>>, %arg3: memref<1x128xf32, #tpu.memory_space<vmem>>, %arg4: memref<2x16x128xf32, #tpu.memory_space<vmem>>) attributes {dimension_semantics = [#tpu.dimension_semantics<parallel>], iteration_bounds = array<i64: 2>, scalar_prefetch = 0 : i64, scratch_operands = 0 : i64, tpu.core_type = #tpu.core_type<tc>, window_params = [{transform_indices = @transform_0, window_bounds = array<i64: 2, 16, 128>}, {pipeline_mode = #tpu.pipeline_mode<synchronous>, transform_indices = @transform_1, window_bounds = array<i64: 1, 128>}, {pipeline_mode = #tpu.pipeline_mode<synchronous>, transform_indices = @transform_2, window_bounds = array<i64: 1, 128>}, {transform_indices = @transform_3, window_bounds = array<i64: 2, 16, 128>}]} {
    %c0 = arith.constant 0 : index
    %c0_0 = arith.constant 0 : index
    %c0_1 = arith.constant 0 : index
    %0 = vector.load %arg1[%c0, %c0_0, %c0_1] : memref<2x16x128xbf16, #tpu.memory_space<vmem>>, vector<2x16x128xbf16>
    %1 = arith.extf %0 : vector<2x16x128xbf16> to vector<2x16x128xf32>
    %c0_2 = arith.constant 0 : index
    %c0_3 = arith.constant 0 : index
    %2 = vector.load %arg2[%c0_2, %c0_3] : memref<1x128xf32, #tpu.memory_space<vmem>>, vector<1x128xf32>
    %3 = vector.shape_cast %2 : vector<1x128xf32> to vector<1x1x128xf32>
    %4 = vector.broadcast %3 : vector<1x1x128xf32> to vector<2x16x128xf32>
    %5 = arith.mulf %1, %4 : vector<2x16x128xf32>
    %c0_4 = arith.constant 0 : index
    %c0_5 = arith.constant 0 : index
    %6 = vector.load %arg3[%c0_4, %c0_5] : memref<1x128xf32, #tpu.memory_space<vmem>>, vector<1x128xf32>
    %7 = vector.shape_cast %6 : vector<1x128xf32> to vector<1x1x128xf32>
    %8 = vector.broadcast %7 : vector<1x1x128xf32> to vector<2x16x128xf32>
    %9 = arith.addf %5, %8 : vector<2x16x128xf32>
    %cst = arith.constant 0.000000e+00 : f32
    %10 = vector.broadcast %cst : f32 to vector<2x16x128xf32>
    %11 = arith.maximumf %9, %10 : vector<2x16x128xf32>
    %c0_6 = arith.constant 0 : index
    %c0_7 = arith.constant 0 : index
    %c0_8 = arith.constant 0 : index
    %12 = vector.load %arg4[%c0_6, %c0_7, %c0_8] : memref<2x16x128xf32, #tpu.memory_space<vmem>>, vector<2x16x128xf32>
    tpu.vector_store %arg4[%c0_6, %c0_7, %c0_8], %11 {strides = array<i32>} : memref<2x16x128xf32, #tpu.memory_space<vmem>>, vector<2x16x128xf32>,
    return
  }
  func.func @transform_0(%arg0: i32) -> (i32, i32, i32) {
    %c0_i32 = arith.constant 0 : i32
    %c0_i32_0 = arith.constant 0 : i32
    %c0_i32_1 = arith.constant 0 : i32
    return %arg0, %c0_i32, %c0_i32_0 : i32, i32, i32
  }
  func.func @transform_1(%arg0: i32) -> (i32, i32) {
    %c0_i32 = arith.constant 0 : i32
    %c0_i32_0 = arith.constant 0 : i32
    %c0_i32_1 = arith.constant 0 : i32
    return %c0_i32, %c0_i32_0 : i32, i32
  }
  func.func @transform_2(%arg0: i32) -> (i32, i32) {
    %c0_i32 = arith.constant 0 : i32
    %c0_i32_0 = arith.constant 0 : i32
    %c0_i32_1 = arith.constant 0 : i32
    return %c0_i32, %c0_i32_0 : i32, i32
  }
  func.func @transform_3(%arg0: i32) -> (i32, i32, i32) {
    %c0_i32 = arith.constant 0 : i32
    %c0_i32_0 = arith.constant 0 : i32
    %c0_i32_1 = arith.constant 0 : i32
    return %arg0, %c0_i32, %c0_i32_0 : i32, i32, i32
  }
}

</mosaic_0001>

<bundles_post_ra>
// kernel: tile.28
= control target key start
LH: loop header
LB: loop body
LE: loop exit
PB: predicated region body
PF: predicated region fallthrough
CT: control target
= control target key end

     0   :  { %s28_s0 = inlined_call_operand.vmem [shape: f32[8], index: 0, kind: input, shape index: {}]   ;;  %s29_s1 = inlined_call_operand.vmem [shape: f32[16,8], index: 1, kind: output, shape index: {}]  }
   0x1   :  { %v4_v0 = vld [vmem:[%s28_s0] ss:$0 sm:$0xff] }
   0x2   :  { %5 = vst [vmem:[%s29_s1] sm:$0xff] %v4_v0  ;;  %8 = vst [vmem:[%s29_s1 + $0x8] sm:$0xff] %v4_v0 }

// kernel: tile.29
= control target key start
LH: loop header
LB: loop body
LE: loop exit
PB: predicated region body
PF: predicated region fallthrough
CT: control target
= control target key end

     0   :  { %s133_s10 = smov 120   ;;  %s134_s11 = smov 104   ;;  %vm3_vm0 = vcmask 64512   ;;  %vm9_vm1 = vcmask 1048512   ;;  %vm15_vm2 = vcmask 982912   ;;  %vm21_vm3 = vcmask 917312   ;;  %s209_s0 = inlined_call_operand.vmem [shape: f32[16,8], index: 0, kind: input, shape index: {}]   ;;  %s210_s1 = inlined_call_operand.vmem [shape: f32[1,128], index: 1, kind: output, shape index: {}]  }
   0x1   :  { %v103_v0 = vld [vmem:[%s209_s0 + $0xf] sm:$0x1]   ;;  %v105_v1 = vld [vmem:[%s209_s0 + $0xd] sm:$0x1]   ;;  %v104_v2 = vld [vmem:[%s209_s0 + $0xe] sm:$0x1]  }
   0x2   :  { %7 = vrot.lane.b32.xlu0 %v103_v0, %s133_s10  ;;  %19 = vrot.lane.b32.xlu1 %v105_v1, %s134_s11  ;;  %v106_v3 = vld [vmem:[%s209_s0 + $0xc] sm:$0x1]   ;;  %s135_s16 = smov 112   ;;  %s136_s17 = smov 96   ;;  %v107_v4 = vld [vmem:[%s209_s0 + $0xb] sm:$0x1]  }
   0x3   :  { %v108_v5 = vld [vmem:[%s209_s0 + $0xa] sm:$0x1]   ;;  %v2_v6 = vld [vmem:[%s209_s0] sm:$0x1]   ;;  %s137_s24 = smov 88   ;;  %s138_s25 = smov 80  }
   0x4   :  { %4 = vst.msk [vmem:[#allocation0] sm:$0x1] %vm3_vm0, %v2_v6   ;;  %v109_v7 = vld [vmem:[%s209_s0 + $0x9] sm:$0x1]   ;;  %v110_v8 = vld [vmem:[%s209_s0 + $0x8] sm:$0x1]  }
   0x5   :  { %s139_s30 = smov 72   ;;  %s140_s2 = smov 64   ;;  %v111_v9 = vld [vmem:[%s209_s0 + $0x7] sm:$0x1]   ;;  %v112_v10 = vld [vmem:[%s209_s0 + $0x6] sm:$0x1]  }
   0x6   :  { %13 = vrot.lane.b32.xlu0 %v104_v2, %s135_s16  ;;  %25 = vrot.lane.b32.xlu1 %v106_v3, %s136_s17  ;;  %s141_s7 = smov 56   ;;  %s142_s8 = smov 48   ;;  %v113_v11 = vld [vmem:[%s209_s0 + $0x5] sm:$0x1]   ;;  %v114_v12 = vld [vmem:[%s209_s0 + $0x4] sm:$0x1]  }
   0x7   :  { %s143_s13 = smov 40   ;;  %s144_s14 = smov 32   ;;  %v115_v13 = vld [vmem:[%s209_s0 + $0x3] sm:$0x1]   ;;  %v116_v14 = vld [vmem:[%s209_s0 + $0x2] sm:$0x1]  }
   0x8   :  { %s145_s19 = smov 24   ;;  %s146_s20 = smov 16   ;;  %v117_v15 = vld [vmem:[%s209_s0 + $0x1] sm:$0x1]   ;;  %vm27_vm4 = vcmask 851712   ;;  %vm33_vm5 = vcmask 786112  }
   0x9   :  { %s147_s0 = smov 8   ;;  %vm39_vm6 = vcmask 720512   ;;  %vm45_vm7 = vcmask 654912   ;;  %vm51_vm8 = vcmask 589312   ;;  %vm57_vm9 = vcmask 523712  }
   0xa   :  { %31 = vrot.lane.b32.xlu0 %v107_v4, %s137_s24  ;;  %37 = vrot.lane.b32.xlu1 %v108_v5, %s138_s25  ;;  %vm63_vm10 = vcmask 458112   ;;  %vm69_vm11 = vcmask 392512   ;;  %vm75_vm12 = vcmask 326912   ;;  %vm81_vm13 = vcmask 261312  }
   0xb   :  { %vm87_vm14 = vcmask 195712   ;;  %vm93_vm15 = vcmask 130112  }
   0xe   :  { %43 = vrot.lane.b32.xlu0 %v109_v7, %s139_s30  ;;  %49 = vrot.lane.b32.xlu1 %v110_v8, %s140_s2 }
  0x12   :  { %55 = vrot.lane.b32.xlu0 %v111_v9, %s141_s7  ;;  %61 = vrot.lane.b32.xlu1 %v112_v10, %s142_s8 }
  0x16   :  { %67 = vrot.lane.b32.xlu0 %v113_v11, %s143_s13  ;;  %73 = vrot.lane.b32.xlu1 %v114_v12, %s144_s14 }
  0x1a   :  { %79 = vrot.lane.b32.xlu0 %v115_v13, %s145_s19  ;;  %85 = vrot.lane.b32.xlu1 %v116_v14, %s146_s20 }
  0x1e   :  { %91 = vrot.lane.b32.xlu0 %v117_v15, %s147_s0 }
  0x74   :  { %v8_v16 = vpop.permute.xlu0 %7   ;;  %v20_v17 = vpop.permute.xlu1 %19  }
  0x75   :  { %10 = vst.msk [vmem:[#allocation0] sm:$0x1] %vm9_vm1, %v8_v16  }
  0x78   :  { %v14_v18 = vpop.permute.xlu0 %13   ;;  %v26_v19 = vpop.permute.xlu1 %25  }
  0x79   :  { %16 = vst.msk [vmem:[#allocation0] sm:$0x1] %vm15_vm2, %v14_v18  }
  0x7a   :  { %22 = vst.msk [vmem:[#allocation0] sm:$0x1] %vm21_vm3, %v20_v17  }
  0x7b   :  { %28 = vst.msk [vmem:[#allocation0] sm:$0x1] %vm27_vm4, %v26_v19  }
  0x7c   :  { %v32_v20 = vpop.permute.xlu0 %31   ;;  %v38_v21 = vpop.permute.xlu1 %37  }
  0x7d   :  { %34 = vst.msk [vmem:[#allocation0] sm:$0x1] %vm33_vm5, %v32_v20  }
  0x7e   :  { %40 = vst.msk [vmem:[#allocation0] sm:$0x1] %vm39_vm6, %v38_v21  }
  0x80   :  { %v44_v22 = vpop.permute.xlu0 %43   ;;  %v50_v23 = vpop.permute.xlu1 %49  }
  0x81   :  { %46 = vst.msk [vmem:[#allocation0] sm:$0x1] %vm45_vm7, %v44_v22  }
  0x82   :  { %52 = vst.msk [vmem:[#allocation0] sm:$0x1] %vm51_vm8, %v50_v23  }
  0x84   :  { %v56_v24 = vpop.permute.xlu0 %55   ;;  %v62_v25 = vpop.permute.xlu1 %61  }
  0x85   :  { %58 = vst.msk [vmem:[#allocation0] sm:$0x1] %vm57_vm9, %v56_v24  }
  0x86   :  { %64 = vst.msk [vmem:[#allocation0] sm:$0x1] %vm63_vm10, %v62_v25  }
  0x88   :  { %v68_v26 = vpop.permute.xlu0 %67   ;;  %v74_v27 = vpop.permute.xlu1 %73  }
  0x89   :  { %70 = vst.msk [vmem:[#allocation0] sm:$0x1] %vm69_vm11, %v68_v26  }
  0x8a   :  { %76 = vst.msk [vmem:[#allocation0] sm:$0x1] %vm75_vm12, %v74_v27  }
  0x8c   :  { %v80_v28 = vpop.permute.xlu0 %79   ;;  %v86_v29 = vpop.permute.xlu1 %85  }
  0x8d   :  { %82 = vst.msk [vmem:[#allocation0] sm:$0x1] %vm81_vm13, %v80_v28  }
  0x8e   :  { %88 = vst.msk [vmem:[#allocation0] sm:$0x1] %vm87_vm14, %v86_v29  }
  0x90   :  { %v92_v30 = vpop.permute.xlu0 %91  }
  0x91   :  { %94 = vst.msk [vmem:[#allocation0] sm:$0x1] %vm93_vm15, %v92_v30  }
  0x98   :  { %v99_v31 = vld [vmem:[#allocation0] sm:$0x1] }
  0x99   :  { %102 = vst [vmem:[%s210_s1] sm:$0x1] %v99_v31 }

// kernel: double_conv.3
= control target key start
LH: loop header
LB: loop body
LE: loop exit
PB: predicated region body
PF: predicated region fallthrough
CT: control target
= control target key end

     0   :  { %s801_s12 = smov 0   ;;  %s872_s0 = inlined_call_operand.vmem [shape: f32[4,16,64], index: 0, kind: input, shape index: {}]   ;;  %s873_s1 = inlined_call_operand.vmem [shape: bf16[3,64,128], index: 1, kind: input, shape index: {}]   ;;  %s874_s2 = inlined_call_operand.vmem [shape: bf16[4,16,128], index: 2, kind: output, shape index: {0}]   ;;  %s875_s3 = inlined_call_operand.vmem [shape: f32[2,2,128], index: 3, kind: output, shape index: {1}]  }
   0x1 LB: > { %s807_s13 = sadd.s32 4294967295, %s779_s12   ;;  %p634_p0 = scmp.ge.s32.totalorder %s779_s12, 1  ;;  %s779_s12 = sphi %s801_s12, %s14_s12  }
   0x2   : > { %p142_p1 = scmp.lt.s32.totalorder %s779_s12, 3 }
   0x4   : > { %p143_p2 = pnand %p634_p0, %p142_p1 }
   0x5   : > { %s635_s16 = sshll.u32 (!%p143_p2), %s807_s13, 1  ;;  %p186_p4 = scmp.lt.s32.totalorder (!%p143_p2), %s807_s13, 1 }
   0x6   : > { %146 = sbr.rel (%p143_p2) target bundleno = 277 (0x115), region = 28  ;;  %p173_p3 = scmp.lt.s32.totalorder (!%p143_p2), %s635_s16, 3 }
   0xb   : > { %v761_v0 = vld [vmem:[%s873_s1 + $0x38] sm:$0xff]   ;;  %v763_v2 = vld [vmem:[%s873_s1 + $0x30] sm:$0xff]   ;;  %s877_s16 = smov (!%p173_p3, %s635_s16), 3  ;;  %v765_v4 = vld [vmem:[%s873_s1 + $0x28] sm:$0xff]   ;;  %vm230_vm0 = vcmask 523264   ;;  %vm473_vm1 = vcmask 1046528  }
   0xc   : > { %v762_v1 = vld [vmem:[%s873_s1 + $0x18] sm:$0xff]   ;;  %717 = vmatprep.subr.bf16.mxu0 %v761_v0  ;;  %v764_v3 = vld [vmem:[%s873_s1 + $0x10] sm:$0xff]   ;;  %v766_v5 = vld [vmem:[%s873_s1 + $0x8] sm:$0xff]   ;;  %s682_s27 = sshll.u32 %s877_s16, 4  ;;  %s683_s19 = sshll.u32 %s877_s16, 3  ;;  %vm538_vm2 = vcmask 1040384  }
   0xd   : > { %718 = vmatpush3.bf16.msra.mxu0 %v761_v0  ;;  %729 = vmatprep.subr.bf16.mxu1 %v762_v1  ;;  %s177_s30 = scalar_lea.vmem %s872_s0, %s682_s27  ;;  %v767_v8 = vld [vmem:[%s873_s1 + $0x20] sm:$0xff]   ;;  %v769_v13 = vld [vmem:[%s873_s1 + $0x58] sm:$0xff]   ;;  %v770_v15 = vld [vmem:[%s873_s1 + $0x50] sm:$0xff]   ;;  %s184_s22 = scalar_lea.vmem %s874_s2, %s683_s19 }
   0xe   : > { %719 = vmatprep.subr.bf16.mxu0 %v763_v2  ;;  %730 = vmatpush3.bf16.msra.mxu1 %v762_v1  ;;  %v191_v6 = vld [vmem:[%s177_s30] sm:$0xff]  ;;  %v192_v7 = vld [vmem:[%s177_s30 + $0x8] sm:$0xff]  ;;  %v193_v11 = vld [vmem:[%s177_s30 + $0x10] sm:$0xff]  ;;  %s879_s13 = smov (!%p186_p4, %s807_s13), 1 }
   0xf   : > { %731 = vmatprep.subr.bf16.mxu1 %v764_v3  ;;  %v195_v9 = vpack.c.bf16 %v192_v7, %v191_v6  ;;  %v768_v10 = vld [vmem:[%s873_s1] sm:$0xff]   ;;  %v194_v12 = vld [vmem:[%s177_s30 + $0x18] sm:$0xff]  ;;  %v771_v16 = vld [vmem:[%s873_s1 + $0x48] sm:$0xff]   ;;  %s641_s16 = sshll.u32 %s879_s13, 1 }
  0x10   : > { %v196_v14 = vpack.c.bf16 %v194_v12, %v193_v11  ;;  %v772_v17 = vld [vmem:[%s873_s1 + $0x40] sm:$0xff]   ;;  %s189_s25 = scalar_lea.vmem %s875_s3, %s641_s16 }
  0x11   : > { %720 = vmatpush3.bf16.msra.mxu0 %v763_v2  ;;  %725 = vmatprep.mubr.msk.bf16.mxu0 %vm230_vm0, %v195_v9 }
  0x12   : > { %721 = vmatprep.subr.bf16.mxu0 %v765_v4  ;;  %732 = vmatpush3.bf16.msra.mxu1 %v764_v3 }
  0x13   : > { %733 = vmatprep.subr.bf16.mxu1 %v766_v5  ;;  %737 = vmatprep.mubr.msk.bf16.mxu1 %vm230_vm0, %v195_v9 }
  0x15   : > { %722 = vmatpush3.bf16.msra.mxu0 %v765_v4 }
  0x16   : > { %723 = vmatprep.subr.bf16.mxu0 %v767_v8  ;;  %734 = vmatpush3.bf16.msra.mxu1 %v766_v5 }
  0x17   : > { %735 = vmatprep.subr.bf16.mxu1 %v768_v10 }
  0x19   : > { %724 = vmatpush3.bf16.msra.mxu0 %v767_v8 }
  0x1a   : > { %736 = vmatpush3.bf16.msra.mxu1 %v768_v10  ;;  %741 = vmatprep.subr.bf16.mxu0 %v769_v13 }
  0x1c   : > { %726 = vmatmul.mubr.msk.bf16.vlgmr.msra.gmra.mxu0 %vm230_vm0, %v196_v14 }
  0x1d   : > { %742 = vmatpush3.bf16.msra.mxu0 %v769_v13  ;;  %738 = vmatmul.mubr.msk.bf16.vlgmr.msra.gmra.mxu1 %vm230_vm0, %v196_v14 }
  0x1e   : > { %743 = vmatprep.subr.bf16.mxu0 %v770_v15  ;;  %749 = vmatprep.mubr.msk.bf16.mxu0 %vm230_vm0, %v195_v9 }
  0x21   : > { %744 = vmatpush3.bf16.msra.mxu0 %v770_v15 }
  0x22   : > { %745 = vmatprep.subr.bf16.mxu0 %v771_v16 }
  0x25   : > { %746 = vmatpush3.bf16.msra.mxu0 %v771_v16 }
  0x26   : > { %747 = vmatprep.subr.bf16.mxu0 %v772_v17 }
  0x29   : > { %748 = vmatpush3.bf16.msra.mxu0 %v772_v17 }
  0x2c   : > { %750 = vmatmul.mubr.msk.bf16.vlgmr.msra.gmra.mxu0 %vm230_vm0, %v196_v14 }
  0xdc   : > { %v727_v18 = vpop.f32.mrf.mxu0 }
  0xdd   : > { %288 = vst [vmem:[#allocation2 + $0x10] sm:$0xff] %v727_v18  ;;  %v739_v20 = vpop.f32.mrf.mxu1 }
  0xde   : > { %v271_v19 = vpop.f32.mrf.mxu0 }
  0xdf   : > { %286 = vst [vmem:[#allocation2] sm:$0xff] %v271_v19  ;;  %v356_v22 = vpop.f32.mrf.mxu1 }
  0xe0   : > { %v728_v21 = vpop.f32.mrf.mxu0 }
  0xe1   : > { %289 = vst [vmem:[#allocation2 + $0x18] sm:$0xff] %v728_v21  ;;  %v740_v24 = vpop.f32.mrf.mxu1 }
  0xe2   : > { %v274_v23 = vpop.f32.mrf.mxu0 }
  0xe3   : > { %287 = vst [vmem:[#allocation2 + $0x8] sm:$0xff] %v274_v23  ;;  %v359_v30 = vpop.f32.mrf.mxu1 }
  0xe8   : > { %v373_v25 = vld [vmem:[#allocation2 + $0x11] sm:$0xff]  ;;  %v374_v26 = vld [vmem:[#allocation2 + $0x19] sm:$0x7f] }
  0xe9   : > { %v377_v27 = vadd.f32 %v739_v20, %v373_v25  ;;  %v378_v28 = vadd.f32 %v740_v24, %v374_v26 }
  0xea   : > { %v371_v29 = vld [vmem:[#allocation2 + $0x1] sm:$0xff]  ;;  %v372_v31 = vld [vmem:[#allocation2 + $0x9] sm:$0x7f] }
  0xeb   : > { %381 = vst [vmem:[#allocation2 + $0x11] sm:$0xff] %v377_v27  ;;  %v375_v32 = vadd.f32 %v371_v29, %v356_v22  ;;  %382 = vst [vmem:[#allocation2 + $0x19] sm:$0x7f] %v378_v28  ;;  %v376_v33 = vadd.f32 %v372_v31, %v359_v30 }
  0xec   : > { %v751_v34 = vpop.f32.mrf.mxu0 }
  0xed   : > { %379 = vst [vmem:[#allocation2 + $0x1] sm:$0xff] %v375_v32  ;;  %380 = vst [vmem:[#allocation2 + $0x9] sm:$0x7f] %v376_v33  ;;  %v477_v37 = vrot.slane %v751_v34, 1 }
  0xee   : > { %v450_v35 = vpop.f32.mrf.mxu0 }
  0xef   : > { %v474_v42 = vrot.slane %v450_v35, 1 }
  0xf0   : > { %v752_v36 = vpop.f32.mrf.mxu0 }
  0xf1   : > { %v478_v38 = vrot.slane %v752_v36, 1 }
  0xf2   : > { %v467_v39 = vld [vmem:[#allocation2 + $0x10] sm:$0xff]  ;;  %v468_v40 = vld [vmem:[#allocation2 + $0x18] sm:$0x7f]  ;;  %v453_v41 = vpop.f32.mrf.mxu0 }
  0xf3   : > { %v479_v43 = vsel %vm473_vm1, %v477_v37, %v478_v38  ;;  %v487_v44 = vadd.f32 %v478_v38, %v468_v40  ;;  %v475_v45 = vrot.slane %v453_v41, 1 }
  0xf4   : > { %v486_v46 = vadd.f32 %v479_v43, %v467_v39  ;;  %v465_v47 = vld [vmem:[#allocation2] sm:$0xff]  ;;  %v466_v48 = vld [vmem:[#allocation2 + $0x8] sm:$0x7f] }
  0xf5   : > { %491 = vst [vmem:[#allocation2 + $0x18] sm:$0x7f] %v487_v44  ;;  %v476_v49 = vsel %vm473_vm1, %v474_v42, %v475_v45  ;;  %v485_v50 = vadd.f32 %v475_v45, %v466_v48 }
  0xf6   : > { %490 = vst [vmem:[#allocation2 + $0x10] sm:$0xff] %v486_v46  ;;  %v484_v51 = vadd.f32 %v476_v49, %v465_v47  ;;  %v527_v59 = vmul.f32 %v486_v46, %v486_v46 }
  0xf7   : > { %489 = vst [vmem:[#allocation2 + $0x8] sm:$0x7f] %v485_v50 }
  0xf8   : > { %488 = vst [vmem:[#allocation2] sm:$0xff] %v484_v51  ;;  %v525_v56 = vmul.f32 %v484_v51, %v484_v51 }
  0xfc   : > { %v495_v52 = vld [vmem:[#allocation2 + $0x18] sm:$0xff] }
  0xfd   : > { %v696_v58 = vpack.c.bf16 %v495_v52, %v486_v46  ;;  %v528_v62 = vmul.f32 %v495_v52, %v495_v52 }
  0xfe   : > { %v493_v53 = vld [vmem:[#allocation2 + $0x8] sm:$0xff] }
  0xff   : > { %v691_v54 = vpack.c.bf16 %v493_v53, %v484_v51  ;;  %v516_v55 = vadd.f32 %v493_v53, %v484_v51  ;;  %v526_v57 = vmul.f32 %v493_v53, %v493_v53  ;;  %698 = vst [vmem:[%s184_s22 + $0x8] sm:$0xff] %v696_v58  }
 0x101   : > { %692 = vst [vmem:[%s184_s22] sm:$0xff] %v691_v54   ;;  %v517_v60 = vadd.f32 %v516_v55, %v486_v46  ;;  %v529_v61 = vadd.f32 %v526_v57, %v525_v56 }
 0x103   : > { %v518_v63 = vadd.f32 %v517_v60, %v495_v52  ;;  %v530_v0 = vadd.f32 %v529_v61, %v527_v59 }
 0x105   : > { %v519_v1 = vrot.slane %v518_v63, 4  ;;  %v531_v2 = vadd.f32 %v530_v0, %v528_v62 }
 0x107   : > { %v520_v3 = vadd.f32 %v519_v1, %v518_v63  ;;  %v532_v4 = vrot.slane %v531_v2, 4 }
 0x109   : > { %v521_v5 = vrot.slane %v520_v3, 2  ;;  %v533_v6 = vadd.f32 %v532_v4, %v531_v2 }
 0x10b   : > { %v522_v7 = vadd.f32 %v521_v5, %v520_v3  ;;  %v534_v8 = vrot.slane %v533_v6, 2 }
 0x10d   : > { %v523_v9 = vrot.slane %v522_v7, 1  ;;  %v535_v10 = vadd.f32 %v534_v8, %v533_v6 }
 0x10f   : > { %v536_v11 = vrot.slane %v535_v10, 1  ;;  %v524_v12 = vadd.f32 %v523_v9, %v522_v7 }
 0x111   : > { %v537_v13 = vadd.f32 %v536_v11, %v535_v10 }
 0x113   : > { %v539_v14 = vsel %vm538_vm2, %v524_v12, %v537_v13 }
 0x114   : > { %540 = vst [vmem:[%s189_s25] sm:$0x3] %v539_v14 }
 0x115 PF: > { %s14_s12 = sadd.s32 1, %s779_s12  }
 0x116   : > { %p11_p5 = scmp.ge.s32.totalorder %s14_s12, 4  }
 0x118   :  { %13 = sbr.rel (!%p11_p5) target bundleno = 1 (0x1), region = 72 }

// kernel: double_conv.5
= control target key start
LH: loop header
LB: loop body
LE: loop exit
PB: predicated region body
PF: predicated region fallthrough
CT: control target
= control target key end

     0   :  { %s337_s12 = smov 0   ;;  %s360_s0 = inlined_call_operand.vmem [shape: bf16[4,16,128], index: 0, kind: input, shape index: {}]   ;;  %s361_s1 = inlined_call_operand.vmem [shape: f32[1,128], index: 1, kind: input, shape index: {}]   ;;  %s362_s2 = inlined_call_operand.vmem [shape: f32[1,128], index: 2, kind: input, shape index: {}]   ;;  %s363_s3 = inlined_call_operand.vmem [shape: f32[4,16,128], index: 3, kind: output, shape index: {}]  }
   0x1 LB: > { %s275_s13 = sadd.s32 4294967295, %s315_s12   ;;  %p279_p0 = scmp.ge.s32.totalorder %s315_s12, 1  ;;  %s315_s12 = sphi %s337_s12, %s13_s12  }
   0x2   : > { %p139_p1 = scmp.lt.s32.totalorder %s315_s12, 3 }
   0x4   : > { %p140_p2 = pnand %p279_p0, %p139_p1 }
   0x5   : > { %s280_s14 = sshll.u32 (!%p140_p2), %s275_s13, 1 }
   0x6   : > { %143 = sbr.rel (%p140_p2) target bundleno = 25 (0x19), region = 32  ;;  %p166_p3 = scmp.lt.s32.totalorder (!%p140_p2), %s280_s14, 3 }
   0xb   : > { %s365_s14 = smov (!%p166_p3, %s280_s14), 3  ;;  %v286_v2 = vld [vmem:[%s361_s1] ss:$0 sm:$0xff] }
   0xc   : > { %s290_s15 = sshll.u32 %s365_s14, 3  ;;  %v287_v7 = vld [vmem:[%s362_s2] ss:$0 sm:$0xff]  ;;  %s291_s23 = sshll.u32 %s365_s14, 4 }
   0xd   : > { %s170_s18 = scalar_lea.vmem %s360_s0, %s290_s15  ;;  %s177_s26 = scalar_lea.vmem %s363_s3, %s291_s23 }
   0xe   : > { %v293_v0 = vld [vmem:[%s170_s18] sm:$0xff]   ;;  %v300_v1 = vld [vmem:[%s170_s18 + $0x8] sm:$0xff]  }
   0xf   : > { %v294_v3 = vunpack.c.l.bf16 %v293_v0  ;;  %v295_v4 = vunpack.c.h.bf16 %v293_v0  ;;  %v298_v5 = vunpack.c.l.bf16 %v300_v1  ;;  %v299_v6 = vunpack.c.h.bf16 %v300_v1 }
  0x11   : > { %v194_v8 = vmul.f32 %v294_v3, %v286_v2  ;;  %v195_v9 = vmul.f32 %v295_v4, %v286_v2  ;;  %v196_v10 = vmul.f32 %v298_v5, %v286_v2  ;;  %v197_v11 = vmul.f32 %v299_v6, %v286_v2 }
  0x13   : > { %v205_v12 = vadd.f32 %v287_v7, %v194_v8  ;;  %v206_v13 = vadd.f32 %v287_v7, %v195_v9  ;;  %v207_v14 = vadd.f32 %v287_v7, %v196_v10  ;;  %v208_v15 = vadd.f32 %v287_v7, %v197_v11 }
  0x15   : > { %v209_v16 = vmax.f32 %v205_v12, 0.0  ;;  %v210_v17 = vmax.f32 %v206_v13, 0.0  ;;  %v211_v18 = vmax.f32 %v207_v14, 0.0  ;;  %v212_v19 = vmax.f32 %v208_v15, 0.0 }
  0x17   : > { %213 = vst [vmem:[%s177_s26] sm:$0xff] %v209_v16  ;;  %214 = vst [vmem:[%s177_s26 + $0x8] sm:$0xff] %v210_v17 }
  0x18   : > { %215 = vst [vmem:[%s177_s26 + $0x10] sm:$0xff] %v211_v18  ;;  %216 = vst [vmem:[%s177_s26 + $0x18] sm:$0xff] %v212_v19 }
  0x19 PF: > { %s13_s12 = sadd.s32 1, %s315_s12  }
  0x1a   : > { %p10_p4 = scmp.ge.s32.totalorder %s13_s12, 4  }
  0x1c   :  { %12 = sbr.rel (!%p10_p4) target bundleno = 1 (0x1), region = 62 }

// kernel: double_conv.4
= control target key start
LH: loop header
LB: loop body
LE: loop exit
PB: predicated region body
PF: predicated region fallthrough
CT: control target
= control target key end

     0   :  { %s1065_s18 = smov 0   ;;  %s1175_s0 = inlined_call_operand.vmem [shape: bf16[4,16,128], index: 0, kind: input, shape index: {}]   ;;  %s1176_s1 = inlined_call_operand.vmem [shape: f32[1,128], index: 1, kind: input, shape index: {}]   ;;  %s1177_s2 = inlined_call_operand.vmem [shape: f32[1,128], index: 2, kind: input, shape index: {}]   ;;  %s1178_s3 = inlined_call_operand.vmem [shape: bf16[3,128,128], index: 3, kind: input, shape index: {}]   ;;  %s1179_s4 = inlined_call_operand.vmem [shape: bf16[4,16,128], index: 4, kind: output, shape index: {0}]   ;;  %s1180_s5 = inlined_call_operand.vmem [shape: f32[2,2,128], index: 5, kind: output, shape index: {1}]  }
   0x1 LB: > { %s1071_s19 = sadd.s32 4294967295, %s1033_s18   ;;  %p807_p0 = scmp.ge.s32.totalorder %s1033_s18, 1  ;;  %s1033_s18 = sphi %s1065_s18, %s16_s18  }
   0x2   : > { %p192_p1 = scmp.lt.s32.totalorder %s1033_s18, 3 }
   0x4   : > { %p193_p2 = pnand %p807_p0, %p192_p1 }
   0x5   : > { %s808_s22 = sshll.u32 (!%p193_p2), %s1071_s19, 1  ;;  %p240_p4 = scmp.lt.s32.totalorder (!%p193_p2), %s1071_s19, 1 }
   0x6   : > { %196 = sbr.rel (%p193_p2) target bundleno = 309 (0x135), region = 36  ;;  %p227_p3 = scmp.lt.s32.totalorder (!%p193_p2), %s808_s22, 3 }
   0xb   : > { %v1003_v0 = vld [vmem:[%s1178_s3 + $0x78] sm:$0xff]   ;;  %v1004_v1 = vld [vmem:[%s1178_s3 + $0x70] sm:$0xff]   ;;  %v1005_v3 = vld [vmem:[%s1178_s3 + $0x68] sm:$0xff]   ;;  %s1182_s22 = smov (!%p227_p3, %s808_s22), 3  ;;  %vm646_vm0 = vcmask 1046528   ;;  %s1184_s19 = smov (!%p240_p4, %s1071_s19), 1 }
   0xc   : > { %935 = vmatprep.subr.bf16.mxu0 %v1003_v0  ;;  %v1006_v2 = vld [vmem:[%s1178_s3 + $0x38] sm:$0xff]   ;;  %v1008_v4 = vld [vmem:[%s1178_s3 + $0x30] sm:$0xff]   ;;  %v1010_v5 = vld [vmem:[%s1178_s3 + $0x28] sm:$0xff]   ;;  %s879_s10 = sshll.u32 %s1182_s22, 3  ;;  %s814_s22 = sshll.u32 %s1184_s19, 1  ;;  %vm711_vm1 = vcmask 1040384  }
   0xd   : > { %936 = vmatpush3.bf16.msra.mxu0 %v1003_v0  ;;  %955 = vmatprep.subr.bf16.mxu1 %v1006_v2  ;;  %v1007_v6 = vld [vmem:[%s1178_s3 + $0x60] sm:$0xff]   ;;  %s231_s15 = scalar_lea.vmem %s1175_s0, %s879_s10  ;;  %v1009_v8 = vld [vmem:[%s1178_s3 + $0x58] sm:$0xff]   ;;  %v1011_v9 = vld [vmem:[%s1178_s3 + $0x50] sm:$0xff]   ;;  %s238_s12 = scalar_lea.vmem %s1179_s4, %s879_s10 }
   0xe   : > { %937 = vmatprep.subr.bf16.mxu0 %v1004_v1  ;;  %956 = vmatpush3.bf16.msra.mxu1 %v1006_v2  ;;  %v1012_v7 = vld [vmem:[%s1178_s3 + $0x20] sm:$0xff]   ;;  %v1014_v10 = vld [vmem:[%s1178_s3 + $0x18] sm:$0xff]   ;;  %v903_v15 = vld [vmem:[%s231_s15 + $0x8] sm:$0xff]   ;;  %s243_s14 = scalar_lea.vmem %s1180_s5, %s814_s22 }
   0xf   : > { %957 = vmatprep.subr.bf16.mxu1 %v1008_v4  ;;  %v886_v11 = vld [vmem:[%s231_s15] sm:$0xff]   ;;  %v891_v17 = vunpack.c.l.bf16 %v903_v15  ;;  %v892_v18 = vunpack.c.h.bf16 %v903_v15  ;;  %v1016_v23 = vld [vmem:[%s1178_s3 + $0x10] sm:$0xff]   ;;  %v1013_v26 = vld [vmem:[%s1178_s3 + $0x48] sm:$0xff]  }
  0x10   : > { %v815_v12 = vld [vmem:[%s1176_s1] ss:$0 sm:$0xff]  ;;  %v887_v13 = vunpack.c.l.bf16 %v886_v11  ;;  %v888_v14 = vunpack.c.h.bf16 %v886_v11  ;;  %v1017_v32 = vld [vmem:[%s1178_s3 + $0x8] sm:$0xff]   ;;  %v1018_v37 = vld [vmem:[%s1178_s3 + $0xb8] sm:$0xff]  }
  0x11   : > { %938 = vmatpush3.bf16.msra.mxu0 %v1004_v1  ;;  %v816_v16 = vld [vmem:[%s1177_s2] ss:$0 sm:$0xff]  ;;  %v262_v21 = vmul.f32 %v891_v17, %v815_v12  ;;  %v263_v22 = vmul.f32 %v892_v18, %v815_v12  ;;  %v1020_v39 = vld [vmem:[%s1178_s3 + $0xb0] sm:$0xff]   ;;  %v1021_v40 = vld [vmem:[%s1178_s3 + $0xa8] sm:$0xff]  }
  0x12   : > { %939 = vmatprep.subr.bf16.mxu0 %v1005_v3  ;;  %958 = vmatpush3.bf16.msra.mxu1 %v1008_v4  ;;  %v260_v19 = vmul.f32 %v887_v13, %v815_v12  ;;  %v261_v20 = vmul.f32 %v888_v14, %v815_v12  ;;  %v1015_v33 = vld [vmem:[%s1178_s3 + $0x40] sm:$0xff]   ;;  %v1023_v42 = vld [vmem:[%s1178_s3 + $0x98] sm:$0xff]   ;;  %v1024_v43 = vld [vmem:[%s1178_s3 + $0x90] sm:$0xff]  }
  0x13   : > { %959 = vmatprep.subr.bf16.mxu1 %v1010_v5  ;;  %v273_v29 = vadd.f32 %v816_v16, %v262_v21  ;;  %v274_v30 = vadd.f32 %v816_v16, %v263_v22  ;;  %v1019_v36 = vld [vmem:[%s1178_s3] sm:$0xff]   ;;  %v1025_v44 = vld [vmem:[%s1178_s3 + $0x88] sm:$0xff]  }
  0x14   : > { %v271_v24 = vadd.f32 %v816_v16, %v260_v19  ;;  %v272_v25 = vadd.f32 %v816_v16, %v261_v20  ;;  %v1022_v41 = vld [vmem:[%s1178_s3 + $0xa0] sm:$0xff]  }
  0x15   : > { %940 = vmatpush3.bf16.msra.mxu0 %v1005_v3  ;;  %v277_v34 = vmax.f32 %v273_v29, 0.0  ;;  %v278_v35 = vmax.f32 %v274_v30, 0.0  ;;  %v1026_v45 = vld [vmem:[%s1178_s3 + $0x80] sm:$0xff]  }
  0x16   : > { %941 = vmatprep.subr.bf16.mxu0 %v1007_v6  ;;  %960 = vmatpush3.bf16.msra.mxu1 %v1010_v5  ;;  %v275_v27 = vmax.f32 %v271_v24, 0.0  ;;  %v276_v28 = vmax.f32 %v272_v25, 0.0 }
  0x17   : > { %961 = vmatprep.subr.bf16.mxu1 %v1012_v7  ;;  %v280_v38 = vpack.c.bf16 %v278_v35, %v277_v34 }
  0x18   : > { %v279_v31 = vpack.c.bf16 %v276_v28, %v275_v27 }
  0x19   : > { %942 = vmatpush3.bf16.msra.mxu0 %v1007_v6 }
  0x1a   : > { %943 = vmatprep.subr.bf16.mxu0 %v1009_v8  ;;  %962 = vmatpush3.bf16.msra.mxu1 %v1012_v7 }
  0x1b   : > { %963 = vmatprep.subr.bf16.mxu1 %v1014_v10  ;;  %951 = vmatprep.mubr.bf16.mxu0 %v279_v31 }
  0x1c   : > { %971 = vmatprep.mubr.bf16.mxu1 %v279_v31 }
  0x1d   : > { %944 = vmatpush3.bf16.msra.mxu0 %v1009_v8 }
  0x1e   : > { %945 = vmatprep.subr.bf16.mxu0 %v1011_v9  ;;  %964 = vmatpush3.bf16.msra.mxu1 %v1014_v10 }
  0x1f   : > { %965 = vmatprep.subr.bf16.mxu1 %v1016_v23 }
  0x21   : > { %946 = vmatpush3.bf16.msra.mxu0 %v1011_v9 }
  0x22   : > { %947 = vmatprep.subr.bf16.mxu0 %v1013_v26  ;;  %966 = vmatpush3.bf16.msra.mxu1 %v1016_v23 }
  0x23   : > { %967 = vmatprep.subr.bf16.mxu1 %v1017_v32 }
  0x25   : > { %948 = vmatpush3.bf16.msra.mxu0 %v1013_v26 }
  0x26   : > { %949 = vmatprep.subr.bf16.mxu0 %v1015_v33  ;;  %968 = vmatpush3.bf16.msra.mxu1 %v1017_v32 }
  0x27   : > { %969 = vmatprep.subr.bf16.mxu1 %v1019_v36 }
  0x29   : > { %950 = vmatpush3.bf16.msra.mxu0 %v1015_v33 }
  0x2a   : > { %975 = vmatprep.subr.bf16.mxu0 %v1018_v37  ;;  %970 = vmatpush3.bf16.msra.mxu1 %v1019_v36 }
  0x2c   : > { %952 = vmatmul.mubr.bf16.vlgmr.msra.gmra.mxu0 %v280_v38 }
  0x2d   : > { %976 = vmatpush3.bf16.msra.mxu0 %v1018_v37  ;;  %991 = vmatprep.mubr.bf16.mxu0 %v279_v31 }
  0x2e   : > { %977 = vmatprep.subr.bf16.mxu0 %v1020_v39  ;;  %972 = vmatmul.mubr.bf16.vlgmr.msra.gmra.mxu1 %v280_v38 }
  0x31   : > { %978 = vmatpush3.bf16.msra.mxu0 %v1020_v39 }
  0x32   : > { %979 = vmatprep.subr.bf16.mxu0 %v1021_v40 }
  0x35   : > { %980 = vmatpush3.bf16.msra.mxu0 %v1021_v40 }
  0x36   : > { %981 = vmatprep.subr.bf16.mxu0 %v1022_v41 }
  0x39   : > { %982 = vmatpush3.bf16.msra.mxu0 %v1022_v41 }
  0x3a   : > { %983 = vmatprep.subr.bf16.mxu0 %v1023_v42 }
  0x3d   : > { %984 = vmatpush3.bf16.msra.mxu0 %v1023_v42 }
  0x3e   : > { %985 = vmatprep.subr.bf16.mxu0 %v1024_v43 }
  0x41   : > { %986 = vmatpush3.bf16.msra.mxu0 %v1024_v43 }
  0x42   : > { %987 = vmatprep.subr.bf16.mxu0 %v1025_v44 }
  0x45   : > { %988 = vmatpush3.bf16.msra.mxu0 %v1025_v44 }
  0x46   : > { %989 = vmatprep.subr.bf16.mxu0 %v1026_v45 }
  0x49   : > { %990 = vmatpush3.bf16.msra.mxu0 %v1026_v45 }
  0x4c   : > { %992 = vmatmul.mubr.bf16.vlgmr.msra.gmra.mxu0 %v280_v38 }
  0xec   : > { %v953_v46 = vpop.f32.mrf.mxu0 }
  0xed   : > { %397 = vst [vmem:[#allocation2 + $0x10] sm:$0xff] %v953_v46 }
  0xee   : > { %v380_v47 = vpop.f32.mrf.mxu0  ;;  %v973_v48 = vpop.f32.mrf.mxu1 }
  0xef   : > { %395 = vst [vmem:[#allocation2] sm:$0xff] %v380_v47 }
  0xf0   : > { %v954_v49 = vpop.f32.mrf.mxu0  ;;  %v497_v50 = vpop.f32.mrf.mxu1 }
  0xf1   : > { %398 = vst [vmem:[#allocation2 + $0x18] sm:$0xff] %v954_v49 }
  0xf2   : > { %v383_v51 = vpop.f32.mrf.mxu0  ;;  %v974_v52 = vpop.f32.mrf.mxu1 }
  0xf3   : > { %396 = vst [vmem:[#allocation2 + $0x8] sm:$0xff] %v383_v51 }
  0xf4   : > { %v500_v55 = vpop.f32.mrf.mxu1 }
  0xf8   : > { %v514_v53 = vld [vmem:[#allocation2 + $0x11] sm:$0xff]  ;;  %v515_v54 = vld [vmem:[#allocation2 + $0x19] sm:$0x7f] }
  0xf9   : > { %v518_v56 = vadd.f32 %v973_v48, %v514_v53  ;;  %v519_v57 = vadd.f32 %v974_v52, %v515_v54 }
  0xfa   : > { %v512_v58 = vld [vmem:[#allocation2 + $0x1] sm:$0xff]  ;;  %v513_v59 = vld [vmem:[#allocation2 + $0x9] sm:$0x7f] }
  0xfb   : > { %522 = vst [vmem:[#allocation2 + $0x11] sm:$0xff] %v518_v56  ;;  %v516_v60 = vadd.f32 %v512_v58, %v497_v50  ;;  %523 = vst [vmem:[#allocation2 + $0x19] sm:$0x7f] %v519_v57  ;;  %v517_v61 = vadd.f32 %v513_v59, %v500_v55 }
  0xfd   : > { %520 = vst [vmem:[#allocation2 + $0x1] sm:$0xff] %v516_v60  ;;  %521 = vst [vmem:[#allocation2 + $0x9] sm:$0x7f] %v517_v61 }
 0x102   : > { %v641_v3 = vld [vmem:[#allocation2 + $0x18] sm:$0x7f]  ;;  %v640_v6 = vld [vmem:[#allocation2 + $0x10] sm:$0xff] }
 0x104   : > { %v639_v11 = vld [vmem:[#allocation2 + $0x8] sm:$0x7f]  ;;  %v638_v12 = vld [vmem:[#allocation2] sm:$0xff] }
 0x10c   : > { %v993_v62 = vpop.f32.mrf.mxu0 }
 0x10d   : > { %v650_v1 = vrot.slane %v993_v62, 1 }
 0x10e   : > { %v623_v63 = vpop.f32.mrf.mxu0 }
 0x10f   : > { %v647_v5 = vrot.slane %v623_v63, 1 }
 0x110   : > { %v994_v0 = vpop.f32.mrf.mxu0 }
 0x111   : > { %v651_v2 = vrot.slane %v994_v0, 1 }
 0x112   : > { %v626_v4 = vpop.f32.mrf.mxu0 }
 0x113   : > { %v652_v7 = vsel %vm646_vm0, %v650_v1, %v651_v2  ;;  %v660_v8 = vadd.f32 %v651_v2, %v641_v3  ;;  %v648_v9 = vrot.slane %v626_v4, 1 }
 0x114   : > { %v659_v10 = vadd.f32 %v652_v7, %v640_v6 }
 0x115   : > { %664 = vst [vmem:[#allocation2 + $0x18] sm:$0x7f] %v660_v8  ;;  %v649_v13 = vsel %vm646_vm0, %v647_v5, %v648_v9  ;;  %v658_v14 = vadd.f32 %v648_v9, %v639_v11 }
 0x116   : > { %663 = vst [vmem:[#allocation2 + $0x10] sm:$0xff] %v659_v10  ;;  %v657_v15 = vadd.f32 %v649_v13, %v638_v12  ;;  %v700_v23 = vmul.f32 %v659_v10, %v659_v10 }
 0x117   : > { %662 = vst [vmem:[#allocation2 + $0x8] sm:$0x7f] %v658_v14 }
 0x118   : > { %661 = vst [vmem:[#allocation2] sm:$0xff] %v657_v15  ;;  %v698_v20 = vmul.f32 %v657_v15, %v657_v15 }
 0x11c   : > { %v668_v16 = vld [vmem:[#allocation2 + $0x18] sm:$0xff] }
 0x11d   : > { %v901_v22 = vpack.c.bf16 %v668_v16, %v659_v10  ;;  %v701_v26 = vmul.f32 %v668_v16, %v668_v16 }
 0x11e   : > { %v666_v17 = vld [vmem:[#allocation2 + $0x8] sm:$0xff] }
 0x11f   : > { %v896_v18 = vpack.c.bf16 %v666_v17, %v657_v15  ;;  %v689_v19 = vadd.f32 %v666_v17, %v657_v15  ;;  %v699_v21 = vmul.f32 %v666_v17, %v666_v17  ;;  %904 = vst [vmem:[%s238_s12 + $0x8] sm:$0xff] %v901_v22  }
 0x121   : > { %897 = vst [vmem:[%s238_s12] sm:$0xff] %v896_v18   ;;  %v690_v24 = vadd.f32 %v689_v19, %v659_v10  ;;  %v702_v25 = vadd.f32 %v699_v21, %v698_v20 }
 0x123   : > { %v691_v27 = vadd.f32 %v690_v24, %v668_v16  ;;  %v703_v28 = vadd.f32 %v702_v25, %v700_v23 }
 0x125   : > { %v692_v29 = vrot.slane %v691_v27, 4  ;;  %v704_v30 = vadd.f32 %v703_v28, %v701_v26 }
 0x127   : > { %v693_v31 = vadd.f32 %v692_v29, %v691_v27  ;;  %v705_v32 = vrot.slane %v704_v30, 4 }
 0x129   : > { %v694_v33 = vrot.slane %v693_v31, 2  ;;  %v706_v34 = vadd.f32 %v705_v32, %v704_v30 }
 0x12b   : > { %v695_v35 = vadd.f32 %v694_v33, %v693_v31  ;;  %v707_v36 = vrot.slane %v706_v34, 2 }
 0x12d   : > { %v696_v37 = vrot.slane %v695_v35, 1  ;;  %v708_v38 = vadd.f32 %v707_v36, %v706_v34 }
 0x12f   : > { %v709_v39 = vrot.slane %v708_v38, 1  ;;  %v697_v40 = vadd.f32 %v696_v37, %v695_v35 }
 0x131   : > { %v710_v41 = vadd.f32 %v709_v39, %v708_v38 }
 0x133   : > { %v712_v42 = vsel %vm711_vm1, %v697_v40, %v710_v41 }
 0x134   : > { %713 = vst [vmem:[%s243_s14] sm:$0x3] %v712_v42 }
 0x135 PF: > { %s16_s18 = sadd.s32 1, %s1033_s18  }
 0x136   : > { %p13_p5 = scmp.ge.s32.totalorder %s16_s18, 4  }
 0x138   :  { %15 = sbr.rel (!%p13_p5) target bundleno = 1 (0x1), region = 80 }

</bundles_post_ra>
